<compile_context>
chip_gen: v7x
topology: tpu7x:2x2x1
jax: 0.10.0
libtpu: 0.0.40
codegen_flags: <defaults>
</compile_context>

<pallas_src>
import functools

import jax
import jax.numpy as jnp
from jax.experimental import pallas as pl
from jax.experimental.pallas import tpu as pltpu


HIDDEN = 64                     # fixed by the PyTorch module
_W = 2 * HIDDEN                 # 128 packed feature lanes: [actor | critic]
_SLAB_ROWS = 8 + _W + _W + 8    # 272 = L1(8) + L2(128) + L3(128) + bias rows(8)
_SPLIT_ROWS = 1024              # batches >= this get an even grid (feed both v7x TCs)


def _cdiv(a, b):
    return -(-a // b)


def _round_up(a, b):
    return _cdiv(a, b) * b


# --------------------------------------------------------------------------------------
# Kernel
# --------------------------------------------------------------------------------------
def _policy_fused_kernel(x_ref, w_ref, out_ref, *, action_space, bf16_eup):
    """Fused actor+critic forward on one batch tile.

    x_ref  : (bb, 8)    = [state (S lanes) | 1 (bias lane) | zero pad]
    w_ref  : (272, 128) packed weight slab (see pack_params)
    out_ref: (bb, 128)  = [actor probs (A lanes) | value (1 lane) | padding]
    """
    def _tanh(z):
        if bf16_eup:  # bf16 EUP path (v6e/v7x): ~2x transcendental throughput
            return jnp.tanh(z.astype(jnp.bfloat16)).astype(jnp.float32)
        return jnp.tanh(z)

    x = x_ref[...]

    # Layer 1: bias folded into the weight row selected by x's ones-column.
    h1 = _tanh(jnp.dot(x, w_ref[0:8, :], preferred_element_type=jnp.float32))

    bias_blk = w_ref[264:272, :]            # aligned (8, 128) read; rows 0/1 used

    # Layer 2: block-diagonal keeps actor (lanes 0:64) / critic (lanes 64:128) separate.
    h2 = _tanh(
        jnp.dot(h1, w_ref[8:136, :], preferred_element_type=jnp.float32)
        + bias_blk[0:1, :]
    )

    # Layer 3: actor logits land in lanes 0:A, critic value in lane A.
    z3 = (
        jnp.dot(h2, w_ref[136:264, :], preferred_element_type=jnp.float32)
        + bias_blk[1:2, :]
    )

    # Numerically-stable softmax over the actor lanes only.
    lane = jax.lax.broadcasted_iota(jnp.int32, z3.shape, 1)
    actor_mask = lane < action_space
    masked = jnp.where(actor_mask, z3, -jnp.inf)
    m = jnp.max(masked, axis=-1, keepdims=True)
    shifted = masked - m
    if bf16_eup:
        e = jnp.exp(shifted.astype(jnp.bfloat16)).astype(jnp.float32)
    else:
        e = jnp.exp(shifted)                              # exactly 0 outside actor lanes
    denom = jnp.sum(e, axis=-1, keepdims=True)            # >= 1 (max lane contributes 1)
    probs = e / denom          # exact normalization: probs feed Categorical / log_prob

    # Lane-dense output slab: probs in lanes 0:A, value (=z3) in lane A, logits above.
    out_ref[...] = jnp.where(actor_mask, probs, z3).astype(out_ref.dtype)


# --------------------------------------------------------------------------------------
# Host-side weight packing  (call ONCE per parameter update, never per environment step)
# --------------------------------------------------------------------------------------
def pack_params(p, state_space, action_space):
    """Pack all six Linear layers (weights stored (in, out)) into one (272, 128) slab."""
    H = HIDDEN
    assert state_space + 1 <= 8, "state_space must fit in the 8-lane padded input"
    assert action_space + 1 <= _W, "action_space + value lane must fit in 128 lanes"

    slab = jnp.zeros((_SLAB_ROWS, _W), dtype=jnp.float32)

    # Layer 1 (rows 0:8): weights + bias folded into row `state_space` (ones column in x).
    slab = slab.at[0:state_space, 0:H].set(p["w1a"])
    slab = slab.at[0:state_space, H:2 * H].set(p["w1c"])
    slab = slab.at[state_space, 0:H].set(p["b1a"].reshape(-1))
    slab = slab.at[state_space, H:2 * H].set(p["b1c"].reshape(-1))

    # Layer 2 (rows 8:136): block-diagonal.
    slab = slab.at[8:8 + H, 0:H].set(p["w2a"])
    slab = slab.at[8 + H:8 + 2 * H, H:2 * H].set(p["w2c"])

    # Layer 3 (rows 136:264): actor -> lanes 0:A, critic -> lane A.
    slab = slab.at[136:136 + H, 0:action_space].set(p["w3a"])
    slab = slab.at[136 + H:136 + 2 * H, action_space:action_space + 1].set(p["w3c"])

    # Bias rows (264 / 265).
    slab = slab.at[264, 0:H].set(p["b2a"].reshape(-1))
    slab = slab.at[264, H:2 * H].set(p["b2c"].reshape(-1))
    slab = slab.at[265, 0:action_space].set(p["b3a"].reshape(-1))
    slab = slab.at[265, action_space].set(p["b3c"][0, 0])
    return slab


# --------------------------------------------------------------------------------------
# Wrapper
# --------------------------------------------------------------------------------------
def policy_forward(x, w_slab, action_space, *, block_b=2048,
                   out_dtype=jnp.float32, bf16_eup=False):
    """x: (B, state_space) float32. Returns (action_probs (B, A), value (B, 1)).

    block_b   : batch tile (big tiles amortize the ~0.35 us per-grid-step overhead).
    out_dtype : jnp.bfloat16 halves the output HBM writeback (worth it on v5e/v6e).
    bf16_eup  : bf16 tanh/exp (v6e/v7x only; keep False on v5e - no bf16 EUP).
    """
    B, S = x.shape
    assert S + 1 <= 8

    # ---- Batch tiling ------------------------------------------------------------
    row_align = 16 if out_dtype == jnp.bfloat16 else 8
    B8 = _round_up(max(B, 8), 8)
    bb = min(block_b, B8)
    if B8 >= _SPLIT_ROWS:
        # Large rollout batch: pick an even number of grid steps so the "parallel"
        # batch axis balances across v7x's two TensorCores (neutral on v5e/v6e).
        n_steps = max(2, _cdiv(B8, bb))
        n_steps += n_steps % 2
        bb = _round_up(_cdiv(B8, n_steps), row_align)
    else:
        bb = _round_up(bb, row_align)
    n_steps = _cdiv(B8, bb)
    B_pad = n_steps * bb

    # ---- Input augmentation: [x | 1 | zero pad] in one concat + one pad -----------
    xf = x.astype(jnp.float32)
    cols = [xf, jnp.ones((B, 1), jnp.float32)]
    if 8 - (S + 1) > 0:
        cols.append(jnp.zeros((B, 8 - (S + 1)), jnp.float32))
    x_aug = jnp.concatenate(cols, axis=1)
    if B_pad != B:
        # Padded rows have a zero bias lane -> they run a cheap, finite forward pass
        # whose results are sliced off below.
        x_aug = jnp.pad(x_aug, ((0, B_pad - B), (0, 0)))

    kernel = functools.partial(
        _policy_fused_kernel, action_space=action_space, bf16_eup=bf16_eup
    )

    out = pl.pallas_call(
        kernel,
        out_shape=jax.ShapeDtypeStruct((B_pad, _W), out_dtype),
        grid=(B_pad // bb,),
        in_specs=[
            pl.BlockSpec((bb, 8), lambda i: (i, 0)),            # batch-tiled activations
            # Constant index_map: the weight slab is DMA'd once and stays VMEM-resident
            # across all batch tiles (pl.Buffered(1) would also drop its 139 KB second
            # pipeline buffer; omitted for interpret-mode portability).
            pl.BlockSpec((_SLAB_ROWS, _W), lambda i: (0, 0)),
        ],
        out_specs=pl.BlockSpec((bb, _W), lambda i: (i, 0)),
        compiler_params=pltpu.CompilerParams(
            dimension_semantics=("parallel",),                  # shard batch tiles across TCs
        ),
    )(x_aug, w_slab)

    probs = out[:B, :action_space].astype(jnp.float32)
    value = out[:B, action_space:action_space + 1].astype(jnp.float32)
    return probs, value


# --------------------------------------------------------------------------------------
# Parameter init (matches Policy.init_weights: N(0,1) weights, zero biases) + reference
# --------------------------------------------------------------------------------------
def init_params(key, state_space, action_space, hidden):
    """Weights stored as (in, out) = torch weight transposed. Biases as (1, out)."""
    ks = jax.random.split(key, 6)

    def lin(k, n_in, n_out):
        w = jax.random.normal(k, (n_in, n_out), dtype=jnp.float32)
        b = jnp.zeros((1, n_out), dtype=jnp.float32)
        return w, b

    w1a, b1a = lin(ks[0], state_space, hidden)
    w2a, b2a = lin(ks[1], hidden, hidden)
    w3a, b3a = lin(ks[2], hidden, action_space)
    w1c, b1c = lin(ks[3], state_space, hidden)
    w2c, b2c = lin(ks[4], hidden, hidden)
    w3c, b3c = lin(ks[5], hidden, 1)
    return dict(
        w1a=w1a, b1a=b1a, w2a=w2a, b2a=b2a, w3a=w3a, b3a=b3a,
        w1c=w1c, b1c=b1c, w2c=w2c, b2c=b2c, w3c=w3c, b3c=b3c,
    )


def policy_forward_ref(x, p):
    """Pure-JAX reference for sanity checking."""
    h = jnp.tanh(x @ p["w1a"] + p["b1a"])
    h = jnp.tanh(h @ p["w2a"] + p["b2a"])
    logits = h @ p["w3a"] + p["b3a"]
    probs = jax.nn.softmax(logits, axis=-1)
    c = jnp.tanh(x @ p["w1c"] + p["b1c"])
    c = jnp.tanh(c @ p["w2c"] + p["b2c"])
    value = c @ p["w3c"] + p["b3c"]
    return probs, value


if __name__ == "__main__":
    STATE_SPACE = 4     # CartPole observation dim
    ACTION_SPACE = 2    # CartPole action dim
    BATCH = 8

    key = jax.random.PRNGKey(0)
    k_param, k_x = jax.random.split(key)
    params = init_params(k_param, STATE_SPACE, ACTION_SPACE, HIDDEN)
    x = jax.random.normal(k_x, (BATCH, STATE_SPACE), dtype=jnp.float32)

    # Pack once per parameter update (NOT per environment step).
    w_slab = pack_params(params, STATE_SPACE, ACTION_SPACE)

    probs, value = jax.block_until_ready(policy_forward(x, w_slab, ACTION_SPACE))

    # Sanity check against pure-JAX reference.
    probs_ref, value_ref = policy_forward_ref(x, params)
    assert probs.shape == (BATCH, ACTION_SPACE)
    assert value.shape == (BATCH, 1)
    # Exact in-kernel normalization -> rows sum to 1 to f32 rounding.
    assert jnp.allclose(jnp.sum(probs, axis=-1), 1.0, atol=1e-5)
    # Kernel (MXU / interpret) and XLA reference may take different f32-matmul
    # precision paths; with N(0,1) weights the logits/values are O(10), so allow
    # ~1e-2 on the probabilities and ~1e-1 absolute on the value head.
    assert jnp.allclose(probs, probs_ref, atol=2e-2, rtol=1e-2)
    assert jnp.allclose(value, value_ref, atol=1e-1, rtol=2e-2)

    print("KERNEL_OK")
</pallas_src>

<mosaic_0001>
module attributes {stable_mosaic.version = 11 : i64} {
  func.func @_policy_fused_kernel(%arg0: i32, %arg1: memref<8x8xf32, #tpu.memory_space<vmem>>, %arg2: memref<272x128xf32, #tpu.memory_space<vmem>>, %arg3: memref<8x128xf32, #tpu.memory_space<vmem>>) attributes {dimension_semantics = [#tpu.dimension_semantics<parallel>], iteration_bounds = array<i64: 1>, scalar_prefetch = 0 : i64, scratch_operands = 0 : i64, tpu.core_type = #tpu.core_type<tc>, window_params = [{transform_indices = @transform_0, window_bounds = array<i64: 8, 8>}, {pipeline_mode = #tpu.pipeline_mode<synchronous>, transform_indices = @transform_1, window_bounds = array<i64: 272, 128>}, {transform_indices = @transform_2, window_bounds = array<i64: 8, 128>}]} {
    %c0 = arith.constant 0 : index
    %c0_0 = arith.constant 0 : index
    %0 = vector.load %arg1[%c0, %c0_0] : memref<8x8xf32, #tpu.memory_space<vmem>>, vector<8x8xf32>
    %c0_1 = arith.constant 0 : index
    %c0_2 = arith.constant 0 : index
    %1 = vector.load %arg2[%c0_1, %c0_2] : memref<272x128xf32, #tpu.memory_space<vmem>>, vector<8x128xf32>
    %cst = arith.constant dense<0.000000e+00> : vector<8x128xf32>
    %2 = tpu.matmul %0, %1, %cst {dimension_numbers = #tpu.dot_dimension_numbers<[1], [0], [0], [1], [0, 0, 1, 1], [], []>} : vector<8x8xf32>, vector<8x128xf32>, vector<8x128xf32> -> vector<8x128xf32>
    %3 = math.tanh %2 : vector<8x128xf32>
    %c264 = arith.constant 264 : index
    %c0_3 = arith.constant 0 : index
    %4 = vector.load %arg2[%c264, %c0_3] : memref<272x128xf32, #tpu.memory_space<vmem>>, vector<8x128xf32>
    %c8 = arith.constant 8 : index
    %c0_4 = arith.constant 0 : index
    %5 = vector.load %arg2[%c8, %c0_4] : memref<272x128xf32, #tpu.memory_space<vmem>>, vector<128x128xf32>
    %cst_5 = arith.constant dense<0.000000e+00> : vector<8x128xf32>
    %6 = tpu.matmul %3, %5, %cst_5 {dimension_numbers = #tpu.dot_dimension_numbers<[1], [0], [0], [1], [0, 0, 1, 1], [], []>} : vector<8x128xf32>, vector<128x128xf32>, vector<8x128xf32> -> vector<8x128xf32>
    %7 = vector.extract_strided_slice %4 {offsets = [0, 0], sizes = [1, 128], strides = [1, 1]} : vector<8x128xf32> to vector<1x128xf32>
    %8 = vector.broadcast %7 : vector<1x128xf32> to vector<8x128xf32>
    %9 = arith.addf %6, %8 : vector<8x128xf32>
    %10 = math.tanh %9 : vector<8x128xf32>
    %c136 = arith.constant 136 : index
    %c0_6 = arith.constant 0 : index
    %11 = vector.load %arg2[%c136, %c0_6] : memref<272x128xf32, #tpu.memory_space<vmem>>, vector<128x128xf32>
    %cst_7 = arith.constant dense<0.000000e+00> : vector<8x128xf32>
    %12 = tpu.matmul %10, %11, %cst_7 {dimension_numbers = #tpu.dot_dimension_numbers<[1], [0], [0], [1], [0, 0, 1, 1], [], []>} : vector<8x128xf32>, vector<128x128xf32>, vector<8x128xf32> -> vector<8x128xf32>
    %13 = vector.extract_strided_slice %4 {offsets = [1, 0], sizes = [1, 128], strides = [1, 1]} : vector<8x128xf32> to vector<1x128xf32>
    %14 = vector.broadcast %13 : vector<1x128xf32> to vector<8x128xf32>
    %15 = arith.addf %12, %14 : vector<8x128xf32>
    %16 = tpu.iota {dimensions = array<i32: 1>} : vector<8x128xi32>
    %c2_i32 = arith.constant 2 : i32
    %17 = vector.broadcast %c2_i32 : i32 to vector<8x128xi32>
    %18 = arith.cmpi slt, %16, %17 : vector<8x128xi32>
    %cst_8 = arith.constant 0xFF800000 : f32
    %19 = vector.broadcast %cst_8 : f32 to vector<8x128xf32>
    %20 = arith.select %18, %15, %19 : vector<8x128xi1>, vector<8x128xf32>
    %cst_9 = arith.constant dense<0xFF800000> : vector<8xf32>
    %21 = vector.multi_reduction <maximumf>, %20, %cst_9 [1] : vector<8x128xf32> to vector<8xf32>
    %22 = vector.shape_cast %21 : vector<8xf32> to vector<8x1xf32>
    %23 = vector.broadcast %22 : vector<8x1xf32> to vector<8x128xf32>
    %24 = arith.subf %20, %23 : vector<8x128xf32>
    %25 = math.exp %24 : vector<8x128xf32>
    %cst_10 = arith.constant dense<0.000000e+00> : vector<8xf32>
    %26 = vector.multi_reduction <add>, %25, %cst_10 [1] : vector<8x128xf32> to vector<8xf32>
    %27 = vector.shape_cast %26 : vector<8xf32> to vector<8x1xf32>
    %28 = vector.broadcast %27 : vector<8x1xf32> to vector<8x128xf32>
    %29 = arith.divf %25, %28 : vector<8x128xf32>
    %30 = arith.select %18, %29, %15 : vector<8x128xi1>, vector<8x128xf32>
    %c0_11 = arith.constant 0 : index
    %c0_12 = arith.constant 0 : index
    %31 = vector.load %arg3[%c0_11, %c0_12] : memref<8x128xf32, #tpu.memory_space<vmem>>, vector<8x128xf32>
    tpu.vector_store %arg3[%c0_11, %c0_12], %30 {strides = array<i32>} : memref<8x128xf32, #tpu.memory_space<vmem>>, vector<8x128xf32>,
    return
  }
  func.func @transform_0(%arg0: i32) -> (i32, i32) {
    %c0_i32 = arith.constant 0 : i32
    %c0_i32_0 = arith.constant 0 : i32
    return %arg0, %c0_i32 : i32, i32
  }
  func.func @transform_1(%arg0: i32) -> (i32, i32) {
    %c0_i32 = arith.constant 0 : i32
    %c0_i32_0 = arith.constant 0 : i32
    %c0_i32_1 = arith.constant 0 : i32
    return %c0_i32, %c0_i32_0 : i32, i32
  }
  func.func @transform_2(%arg0: i32) -> (i32, i32) {
    %c0_i32 = arith.constant 0 : i32
    %c0_i32_0 = arith.constant 0 : i32
    return %arg0, %c0_i32 : i32, i32
  }
}

</mosaic_0001>

<bundles_post_ra>
// kernel: tpu_custom_call.1
= control target key start
LH: loop header
LB: loop body
LE: loop exit
PB: predicated region body
PF: predicated region fallthrough
CT: control target
= control target key end

     0   :  { %7 = vsyncpa [#allocation3], 0  ;;  %s663_s0 = inlined_call_operand.hbm [shape: f32[8,8], index: 0, kind: input, shape index: {}]   ;;  %s664_s1 = inlined_call_operand.hbm [shape: f32[272,128], index: 1, kind: input, shape index: {}]   ;;  %s665_s2 = inlined_call_operand.hbm [shape: f32[8,128], index: 2, kind: output, shape index: {}]  }
   0x1   :  { %8 = vsyncpa [#allocation6], 0 }
   0x2   :  { %9 = vsyncpa [#allocation4], 0  ;;  %s576_s9 = smov [#allocation2]   ;;  %s577_s11 = smov [#allocation5]  }
   0x3   :  { %s16_s10 = sshll.u32 %s576_s9, 4  ;;  %s25_s12 = sshll.u32 %s577_s11, 4  ;;  %s17_s10 = int_to_ptr.vmem [resolvable:$true] %s16_s10  ;;  %s599_s12 = int_to_ptr.vmem [resolvable:$true] %s25_s12 }
   0x4   :  { %s504_s15 = scalar_lea.hbm %s663_s0, 128 }
   0x5   :  { %p505_p0 = scmp.ne.s32.totalorder %s663_s0, %s504_s15  ;;  %p508_p1 = scmp.lt.u32.totalorder %s504_s15, %s663_s0 }
   0x7   :  { %p510_p2 = pnand %p508_p1, %p505_p0 }
   0x9   :  { %513 = shalt.err (!%p510_p2)
}
   0xa   :  { %s514_s20 = scalar_lea.vmem %s17_s10, 128  ;;  %p519_p4 = scmp.lt.s32.totalorder %s17_s10, %s17_s10 }
   0xb   :  { %p515_p3 = scmp.ne.s32.totalorder %s17_s10, %s514_s20  ;;  %p520_p5 = scmp.lt.s32.totalorder %s514_s20, %s514_s20 }
   0xd   :  { %p521_p6 = por %p520_p5, %p519_p4 }
   0xf   :  { %p522_p7 = pnand %p521_p6, %p515_p3 }
  0x11   :  { %525 = shalt.err (!%p522_p7)
}
  0x12   :  { %19 = dma.hbm_to_vmem [thread:$0]  %s663_s0, 128, %s17_s10, [#allocation3]  }
  0x13   :  { %s526_s25 = scalar_lea.hbm %s664_s1, 4352 }
  0x14   :  { %p527_p8 = scmp.ne.s32.totalorder %s664_s1, %s526_s25  ;;  %p530_p9 = scmp.lt.u32.totalorder %s526_s25, %s664_s1 }
  0x16   :  { %p532_p10 = pnand %p530_p9, %p527_p8 }
  0x18   :  { %535 = shalt.err (!%p532_p10)
}
  0x19   :  { %s536_s30 = scalar_lea.vmem %s599_s12, 4352  ;;  %p541_p12 = scmp.lt.s32.totalorder %s599_s12, %s599_s12 }
  0x1a   :  { %p537_p11 = scmp.ne.s32.totalorder %s599_s12, %s536_s30  ;;  %p542_p13 = scmp.lt.s32.totalorder %s536_s30, %s536_s30 }
  0x1c   :  { %p543_p0 = por %p542_p13, %p541_p12 }
  0x1e   :  { %p544_p1 = pnand %p543_p0, %p537_p11 }
  0x20   :  { %547 = shalt.err (!%p544_p1)
}
  0x21   :  { %s578_s0 = smov 128   ;;  %s579_s3 = smov 8  }
  0x22   :  { %31 = dma.hbm_to_vmem [thread:$0]  %s664_s1, 4352, %s599_s12, [#allocation6], %s578_s0, %s578_s0, %s579_s3  }
  0x23   :  { %570 = dma.done.wait [#allocation3], 128  }
  0x24   :  { %571 = vsyncadd [#allocation3], 4294967168 }
  0x25   :  { %572 = dma.done.wait [#allocation6], 4352  }
  0x26   :  { %573 = vsyncadd [#allocation6], 4294962944  ;;  %v580_v0 = vmov 0.0   ;;  %vm581_vm0 = vmmov 0   ;;  %v582_v1 = vmov 0.0|0.0   ;;  %vm40_vm1 = vcmask 64512  }
  0x27   :  { %365 = vmatprep.subr.mxu0 %v580_v0  ;;  %367 = vmatprep.mubr.msk.f32.mxu0 %vm581_vm0, %v580_v0  ;;  %v39_v2 = vld [vmem:[#allocation5] sm:$0xff]  ;;  %v38_v3 = vld [vmem:[#allocation2] sm:$0xff]  ;;  %v116_v4 = vld [vmem:[#allocation5 + $0x8] sm:$0xff]  ;;  %v132_v55 = vlaneseq  ;;  %s583_s1 = smov [#allocation7]  }
  0x28   :  { %440 = vmatprep.subr.bf16.mxu1 %v582_v1  ;;  %402 = vmatprep.mubr.msk.f32.mxu1 %vm581_vm0, %v580_v0  ;;  %v117_v5 = vld [vmem:[#allocation5 + $0x10] sm:$0xff]  ;;  %v118_v6 = vld [vmem:[#allocation5 + $0x18] sm:$0xff]  ;;  %v119_v7 = vld [vmem:[#allocation5 + $0x20] sm:$0xff]  ;;  %s318_s6 = sshll.u32 %s583_s1, 4  ;;  %s319_s6 = int_to_ptr.vmem [resolvable:$true] %s318_s6 }
  0x29   :  { %366 = vmatpush3.msra.mxu0 %v39_v2  ;;  %v441_v8 = vpack.c.bf16 %v117_v5, %v116_v4  ;;  %v444_v9 = vpack.c.bf16 %v119_v7, %v118_v6  ;;  %v120_v10 = vld [vmem:[#allocation5 + $0x28] sm:$0xff]  ;;  %v121_v11 = vld [vmem:[#allocation5 + $0x30] sm:$0xff]  ;;  %v122_v13 = vld [vmem:[#allocation5 + $0x38] sm:$0xff]  ;;  %v133_v56 = vshrl.u32 %v132_v55, 7  ;;  %v298_v2 = vand.u32 127, %v132_v55  ;;  %s548_s7 = scalar_lea.vmem %s319_s6, 128  ;;  %p553_p3 = scmp.lt.s32.totalorder %s319_s6, %s319_s6 }
  0x2a   :  { %368 = vmatmul.mubr.msk.f32.vlgmr.msra.gmra.mrb[0].mxu0 %vm40_vm1, %v38_v3  ;;  %464 = vmatprep.subr.bf16.mxu0 %v582_v1  ;;  %v447_v12 = vpack.c.bf16 %v121_v11, %v120_v10  ;;  %v123_v14 = vld [vmem:[#allocation5 + $0x40] sm:$0xff]  ;;  %v124_v16 = vld [vmem:[#allocation5 + $0x48] sm:$0xff]  ;;  %v125_v17 = vld [vmem:[#allocation5 + $0x50] sm:$0xff]  ;;  %p549_p2 = scmp.ne.s32.totalorder %s319_s6, %s548_s7  ;;  %p554_p4 = scmp.lt.s32.totalorder %s548_s7, %s548_s7 }
  0x2b   :  { %437 = vmatprep.mubr.msk.f32.mxu0 %vm581_vm0, %v580_v0  ;;  %442 = vmatpush3.bf16.msra.mxu1 %v441_v8  ;;  %v450_v15 = vpack.c.bf16 %v123_v14, %v122_v13  ;;  %v453_v18 = vpack.c.bf16 %v125_v17, %v124_v16  ;;  %v126_v19 = vld [vmem:[#allocation5 + $0x58] sm:$0xff]  ;;  %v127_v20 = vld [vmem:[#allocation5 + $0x60] sm:$0xff]  ;;  %v128_v22 = vld [vmem:[#allocation5 + $0x68] sm:$0xff]  ;;  %v134_v57 = vsub.s32 0, %v133_v56  ;;  %v225_v0 = vsub.s32 1, %v133_v56 }
  0x2c   :  { %443 = vmatprep.subr.bf16.mxu1 %v582_v1  ;;  %v456_v21 = vpack.c.bf16 %v127_v20, %v126_v19  ;;  %v129_v23 = vld [vmem:[#allocation5 + $0x70] sm:$0xff]  ;;  %v130_v25 = vld [vmem:[#allocation5 + $0x78] sm:$0xff]  ;;  %v131_v26 = vld [vmem:[#allocation5 + $0x80] sm:$0xff]  ;;  %vm299_vm2 = vcmp.lt.s32.totalorder %v298_v2, 2  ;;  %p555_p5 = por %p554_p4, %p553_p3 }
  0x2d   :  { %v459_v24 = vpack.c.bf16 %v129_v23, %v128_v22  ;;  %v462_v27 = vpack.c.bf16 %v131_v26, %v130_v25  ;;  %v207_v28 = vld [vmem:[#allocation5 + $0x88] sm:$0xff]  ;;  %v208_v29 = vld [vmem:[#allocation5 + $0x90] sm:$0xff]  ;;  %v209_v30 = vld [vmem:[#allocation5 + $0x98] sm:$0xff] }
  0x2e   :  { %v465_v31 = vpack.c.bf16 %v208_v29, %v207_v28  ;;  %v210_v32 = vld [vmem:[#allocation5 + $0xa0] sm:$0xff]  ;;  %v211_v34 = vld [vmem:[#allocation5 + $0xa8] sm:$0xff]  ;;  %v212_v35 = vld [vmem:[#allocation5 + $0xb0] sm:$0xff]  ;;  %p556_p6 = pnand %p555_p5, %p549_p2 }
  0x2f   :  { %445 = vmatpush3.bf16.msra.mxu1 %v444_v9  ;;  %v468_v33 = vpack.c.bf16 %v210_v32, %v209_v30  ;;  %v471_v36 = vpack.c.bf16 %v212_v35, %v211_v34  ;;  %v213_v37 = vld [vmem:[#allocation5 + $0xb8] sm:$0xff]  ;;  %v214_v38 = vld [vmem:[#allocation5 + $0xc0] sm:$0xff]  ;;  %v215_v40 = vld [vmem:[#allocation5 + $0xc8] sm:$0xff] }
  0x30   :  { %446 = vmatprep.subr.bf16.mxu1 %v582_v1  ;;  %466 = vmatpush3.bf16.msra.mxu0 %v465_v31  ;;  %v474_v39 = vpack.c.bf16 %v214_v38, %v213_v37  ;;  %v216_v41 = vld [vmem:[#allocation5 + $0xd0] sm:$0xff]  ;;  %v217_v46 = vld [vmem:[#allocation5 + $0xd8] sm:$0xff]  ;;  %v218_v47 = vld [vmem:[#allocation5 + $0xe0] sm:$0xff] }
  0x31   :  { %467 = vmatprep.subr.bf16.mxu0 %v582_v1  ;;  %v477_v42 = vpack.c.bf16 %v216_v41, %v215_v40  ;;  %v480_v48 = vpack.c.bf16 %v218_v47, %v217_v46  ;;  %v219_v49 = vld [vmem:[#allocation5 + $0xe8] sm:$0xff]  ;;  %v220_v50 = vld [vmem:[#allocation5 + $0xf0] sm:$0xff]  ;;  %v221_v52 = vld [vmem:[#allocation5 + $0xf8] sm:$0xff] }
  0x32   :  { %v483_v51 = vpack.c.bf16 %v220_v50, %v219_v49  ;;  %v222_v53 = vld [vmem:[#allocation5 + $0x100] sm:$0xff]  ;;  %v115_v58 = vld [vmem:[#allocation5 + $0x108] sm:$0xff] }
  0x33   :  { %448 = vmatpush3.bf16.msra.mxu1 %v447_v12  ;;  %v486_v54 = vpack.c.bf16 %v222_v53, %v221_v52  ;;  %v135_v59 = vrot.slane %v115_v58, %v134_v57  ;;  %v226_v3 = vrot.slane %v115_v58, %v225_v0 }
  0x34   :  { %449 = vmatprep.subr.bf16.mxu1 %v582_v1  ;;  %469 = vmatpush3.bf16.msra.mxu0 %v468_v33 }
  0x35   :  { %470 = vmatprep.subr.bf16.mxu0 %v582_v1 }
  0x37   :  { %451 = vmatpush3.bf16.msra.mxu1 %v450_v15 }
  0x38   :  { %452 = vmatprep.subr.bf16.mxu1 %v582_v1  ;;  %472 = vmatpush3.bf16.msra.mxu0 %v471_v36 }
  0x39   :  { %473 = vmatprep.subr.bf16.mxu0 %v582_v1 }
  0x3b   :  { %454 = vmatpush3.bf16.msra.mxu1 %v453_v18 }
  0x3c   :  { %455 = vmatprep.subr.bf16.mxu1 %v582_v1  ;;  %475 = vmatpush3.bf16.msra.mxu0 %v474_v39 }
  0x3d   :  { %476 = vmatprep.subr.bf16.mxu0 %v582_v1 }
  0x3f   :  { %457 = vmatpush3.bf16.msra.mxu1 %v456_v21 }
  0x40   :  { %458 = vmatprep.subr.bf16.mxu1 %v582_v1  ;;  %478 = vmatpush3.bf16.msra.mxu0 %v477_v42 }
  0x41   :  { %479 = vmatprep.subr.bf16.mxu0 %v582_v1 }
  0x43   :  { %460 = vmatpush3.bf16.msra.mxu1 %v459_v24 }
  0x44   :  { %461 = vmatprep.subr.bf16.mxu1 %v582_v1  ;;  %481 = vmatpush3.bf16.msra.mxu0 %v480_v48 }
  0x45   :  { %482 = vmatprep.subr.bf16.mxu0 %v582_v1 }
  0x47   :  { %463 = vmatpush3.bf16.msra.mxu1 %v462_v27 }
  0x48   :  { %484 = vmatpush3.bf16.msra.mxu0 %v483_v51 }
  0x49   :  { %485 = vmatprep.subr.bf16.mxu0 %v582_v1 }
  0x4c   :  { %487 = vmatpush3.bf16.msra.mxu0 %v486_v54 }
  0xfd   :  { %v110_v43 = vpop.f32.mrb[0].mxu0 }
  0xfe   :  { %496 = vtanh.f32 %v110_v43  ;;  %v369_v44 = vpop.f32.mrb[1].mxu0 }
 0x108   :  { %v497_v45 = vpop.eup %496 }
 0x109   :  { %403 = vmatmul.mubr.f32.vlgmr.msra.gmra.mrb[0].mxu1 %v497_v45 }
 0x1dc   :  { %v202_v60 = vpop.f32.mrb[0].mxu1 }
 0x1dd   :  { %v203_v61 = vadd.f32 %v202_v60, %v135_v59  ;;  %v404_v62 = vpop.f32.mrb[1].mxu1 }
 0x1df   :  { %498 = vtanh.f32 %v203_v61 }
 0x1e9   :  { %v499_v63 = vpop.eup %498 }
 0x1ea   :  { %438 = vmatmul.mubr.f32.vlgmr.msra.gmra.mrb[2].mxu0 %v499_v63 }
 0x2bd   :  { %v293_v4 = vpop.f32.mrb[2].mxu0 }
 0x2be   :  { %v294_v5 = vadd.f32 %v293_v4, %v226_v3  ;;  %v439_v6 = vpop.f32.mrb[3].mxu0 }
 0x2c0   :  { %v300_v1 = vsel %vm299_vm2, %v294_v5, -inf }
 0x2c1   :  { %301 = vmax.xlane.f32.xlu0 %v300_v1 }
 0x34e   :  { %v302_v7 = vpop.xlane.xlu0 %301 }
 0x34f   :  { %v303_v8 = vsub.f32 %v300_v1, %v302_v7 }
 0x351   :  { %v304_v9 = vmul.f32 1.442695, %v303_v8 }
 0x353   :  { %500 = vpow2.f32 %v304_v9 }
 0x35d   :  { %v501_v10 = vpop.eup %500 }
 0x35e   :  { %306 = vadd.xlane.f32.xlu0 %v501_v10 }
 0x3eb   :  { %v307_v11 = vpop.xlane.xlu0 %306 }
 0x3ec   :  { %502 = vrcp.f32 %v307_v11 }
 0x3f6   :  { %v503_v12 = vpop.eup %502 }
 0x3f7   :  { %v309_v13 = vmul.f32 %v503_v12, %v501_v10 }
 0x3f9   :  { %v310_v14 = vsel %vm299_vm2, %v309_v13, %v294_v5 }
 0x3fa   :  { %311 = vst [vmem:[#allocation7] sm:$0xff] %v310_v14 }
 0x3fb   :  { %559 = shalt.err (!%p556_p6)
}
 0x3fc   :  { %s560_s10 = scalar_lea.hbm %s665_s2, 128 }
 0x3fd   :  { %p561_p7 = scmp.ne.s32.totalorder %s665_s2, %s560_s10  ;;  %p564_p8 = scmp.lt.u32.totalorder %s560_s10, %s665_s2 }
 0x3ff   :  { %p566_p9 = pnand %p564_p8, %p561_p7 }
 0x401   :  { %569 = shalt.err (!%p566_p9)
}
 0x402   :  { %321 = dma.vmem_to_hbm [thread:$0]  %s319_s6, 128, %s665_s2, [#allocation4]  }
 0x403   :  { %574 = dma.done.wait [#allocation4], 128  }
 0x404   :  { %575 = vsyncadd [#allocation4], 4294967168 }
 0x405   :  { %325 = vsyncpa [#allocation3], 1 }
 0x406   :  { %326 = vsyncpa [#allocation6], 1 }
 0x407   :  { %327 = vsyncpa [#allocation4], 1 }

</bundles_post_ra>
